<compile_context>
chip_gen: v6e
topology: v6e:2x2x1
jax: 0.10.0
libtpu: 0.0.40
codegen_flags: <defaults>
</compile_context>

<pallas_src>
import functools
import math

import jax
import jax.numpy as jnp
from jax.experimental import pallas as pl
from jax.experimental.pallas import tpu as pltpu


# ------------------------------ Pallas kernels -------------------------------

def _graph_aggr_gsum_kernel(h_ref, w_ref, b_ref, out_ref, *, idx, gdim):
    """One fused MXU pass: [f_m | g_m] matmul, sigmoid gate, per-graph sum."""
    h = h_ref[...]                                           # (rows, ndim) bf16
    # Single lane-aligned matmul producing both the value columns [0:gdim] and
    # the lane-replicated gate columns [gdim:2*gdim] (f32 accumulation).
    y = jnp.dot(h, w_ref[...], preferred_element_type=jnp.float32) + b_ref[...]
    val = y[:, :gdim]
    gate = y[:, gdim:2 * gdim]
    gated = val * jax.nn.sigmoid(gate)                       # (rows, gdim) f32
    bg = out_ref.shape[0]
    # Nodes of each graph are contiguous rows -> per-graph sum is a sublane
    # reduce.  idx % 8 == 0 keeps the reshape a free re-view; other idx are
    # still correct but pay a relayout copy per block.
    out_ref[...] = jnp.sum(gated.reshape(bg, idx, gdim), axis=1)


def _graph_aggr_mean_kernel(h_ref, w_ref, b_ref, out_ref, *, idx):
    """mean(W h + b) == W mean(h) + b: reduce h per graph first, tiny matmul."""
    bg, gdim = out_ref.shape
    ndim = h_ref.shape[-1]
    h = h_ref[...].astype(jnp.float32)                       # (rows, ndim)
    h_mean = jnp.sum(h.reshape(bg, idx, ndim), axis=1) * (1.0 / idx)
    out_ref[...] = (jnp.dot(h_mean, w_ref[...],
                            preferred_element_type=jnp.float32) + b_ref[...])


# ------------------------------ tiling helpers --------------------------------

def _vmem_capacity_bytes():
    try:
        return int(pltpu.get_tpu_info().vmem_capacity_bytes)
    except Exception:
        return 64 << 20          # conservative (v7x per-TC) fallback


def _block_footprint_bytes(bg, idx, ndim, gdim, w_cols, h_itemsize):
    rows = bg * idx
    return (2 * rows * ndim * h_itemsize      # h block, double buffered
            + rows * w_cols * 4               # f32 fused matmul output
            + rows * gdim * 4                 # f32 gated intermediate
            + 2 * ndim * w_cols * 2           # bf16 fused weights (dbl buffered)
            + w_cols * 4                      # fused bias
            + 2 * bg * gdim * 4)              # out block, double buffered


def _pick_graphs_per_block(B, idx, ndim, gdim, w_cols, h_itemsize):
    """Largest sublane-aligned block that fits a generation-aware VMEM budget,
    but never grid=(1,) when >= 2 blocks are possible (keeps both v7x
    TensorCores busy and gives DMA/compute overlap everywhere)."""
    vmem_cap = _vmem_capacity_bytes()
    budget = int(0.4 * vmem_cap)              # headroom for Mosaic scratch etc.

    def fits(bg):
        return _block_footprint_bytes(bg, idx, ndim, gdim, w_cols,
                                      h_itemsize) <= budget

    # bg must keep the out block sublane-aligned (8) and the h block's sublane
    # extent a multiple of 16 (bf16 packing).
    step = 8
    while (step * idx) % 16 != 0:
        step += 8                             # step ends up 8 or 16
    if not fits(step):
        return step if B > step else B        # smallest aligned block
    if B <= step:
        return B                              # tiny batch: one full-array block
    bg = step
    while bg + step <= B // 2 and fits(bg + step):
        bg += step                            # grow block, keep >= 2 grid steps
    return bg


# ------------------------------ kernel wrapper --------------------------------

def graph_aggr(h, idx, params, aggr='gsum', graphs_per_block=None,
               stream_dtype=jnp.bfloat16):
    """GraphAggr.forward(h, idx). h: (B*idx, ndim) -> (B, gdim) float32."""
    N, ndim = h.shape
    assert N % idx == 0, "number of node rows must be a multiple of idx"
    B = N // idx
    w_f, b_f = params['w_f'], params['b_f']
    gdim = w_f.shape[1]

    if aggr == 'gsum':
        w_g, b_g = params['w_g'], params['b_g']
        # Fuse g_m into f_m: one lane-aligned weight slab + fused f32 bias.
        w_cols = pl.cdiv(2 * gdim, 128) * 128
        w = jnp.zeros((ndim, w_cols), jnp.float32)
        w = w.at[:, :gdim].set(w_f.astype(jnp.float32))
        w = w.at[:, gdim:2 * gdim].set(
            jnp.broadcast_to(w_g.astype(jnp.float32), (ndim, gdim)))
        b = jnp.zeros((1, w_cols), jnp.float32)
        b = b.at[:, :gdim].set(b_f.astype(jnp.float32).reshape(1, gdim))
        b = b.at[:, gdim:2 * gdim].set(
            jnp.broadcast_to(b_g.astype(jnp.float32).reshape(1, 1), (1, gdim)))
        w = w.astype(stream_dtype)
    elif aggr == 'mean':
        w_cols = gdim
        w = w_f.astype(jnp.float32)                  # tiny; keep f32 for accuracy
        b = b_f.astype(jnp.float32).reshape(1, gdim)
    else:
        raise ValueError(f"unsupported aggr: {aggr}")

    h = h.astype(stream_dtype)                       # halve HBM traffic for h
    h_itemsize = jnp.dtype(stream_dtype).itemsize

    bg = (graphs_per_block if graphs_per_block is not None else
          _pick_graphs_per_block(B, idx, ndim, gdim, w_cols, h_itemsize))
    bg = min(bg, B)
    B_pad = pl.cdiv(B, bg) * bg
    if bg != B_pad:
        assert bg % 8 == 0 and (bg * idx) % 16 == 0, \
            "tiled graph blocks must be sublane aligned"
    if B_pad != B:
        # Ragged batch: zero-pad whole graphs, slice them off at the end.
        h = jnp.pad(h, ((0, (B_pad - B) * idx), (0, 0)))
    grid = (B_pad // bg,)
    rows = bg * idx

    h_spec = pl.BlockSpec((rows, ndim), lambda i: (i, 0))
    w_spec = pl.BlockSpec((ndim, w_cols), lambda i: (0, 0))
    b_spec = pl.BlockSpec((1, w_cols), lambda i: (0, 0))
    out_spec = pl.BlockSpec((bg, gdim), lambda i: (i, 0))

    if aggr == 'gsum':
        kernel = functools.partial(_graph_aggr_gsum_kernel, idx=idx, gdim=gdim)
        flops = 2 * B_pad * idx * ndim * w_cols + 3 * B_pad * idx * gdim
        transcendentals = B_pad * idx * gdim
    else:
        kernel = functools.partial(_graph_aggr_mean_kernel, idx=idx)
        flops = B_pad * idx * ndim + 2 * B_pad * ndim * gdim
        transcendentals = 0
    bytes_accessed = (h_itemsize * B_pad * idx * ndim
                      + 2 * ndim * w_cols + 4 * w_cols + 4 * B_pad * gdim)

    block_bytes = _block_footprint_bytes(bg, idx, ndim, gdim, w_cols, h_itemsize)
    vmem_cap = _vmem_capacity_bytes()
    vmem_limit = int(min(vmem_cap * 3 // 4, max(16 << 20, 2 * block_bytes)))

    out = pl.pallas_call(
        kernel,
        out_shape=jax.ShapeDtypeStruct((B_pad, gdim), jnp.float32),
        grid=grid,
        in_specs=[h_spec, w_spec, b_spec],
        out_specs=out_spec,
        compiler_params=pltpu.CompilerParams(
            dimension_semantics=("parallel",),
            vmem_limit_bytes=vmem_limit),
        cost_estimate=pl.CostEstimate(
            flops=flops, transcendentals=transcendentals,
            bytes_accessed=bytes_accessed),
    )(h, w, b)
    return out[:B] if B_pad != B else out


# ------------------------------ parameter init --------------------------------

def init_linear(key, fan_in, fan_out):
    """PyTorch nn.Linear default init; weight stored pre-transposed (in, out)."""
    k1, k2 = jax.random.split(key)
    bound = 1.0 / math.sqrt(fan_in)
    w = jax.random.uniform(k1, (fan_in, fan_out), jnp.float32, -bound, bound)
    b = jax.random.uniform(k2, (1, fan_out), jnp.float32, -bound, bound)
    return w, b


def init_graph_aggr(key, ndim, gdim, aggr='gsum'):
    k1, k2 = jax.random.split(key)
    w_f, b_f = init_linear(k1, ndim, gdim)
    p = dict(w_f=w_f, b_f=b_f)
    if aggr == 'gsum':
        w_g, b_g = init_linear(k2, ndim, 1)
        p.update(w_g=w_g, b_g=b_g)
    return p


# ------------------------------------ main -------------------------------------

if __name__ == "__main__":
    ndim, gdim = 32, 16
    B, idx = 2, 8                                 # h: (B*idx, ndim) = (16, 32)

    key = jax.random.PRNGKey(0)
    kp, kh, kh2, kh3 = jax.random.split(key, 4)
    params = init_graph_aggr(kp, ndim, gdim, aggr='gsum')

    hp = jax.lax.Precision.HIGHEST
    _bf = lambda x: x.astype(jnp.bfloat16).astype(jnp.float32)

    def ref_gsum(h, p, idx):
        # emulate the kernel's bf16 streaming (bf16 h/w, f32 accumulation)
        hb, wf, wg = _bf(h), _bf(p['w_f']), _bf(p['w_g'])
        v = jnp.dot(hb, wf, precision=hp) + p['b_f']
        g = jax.nn.sigmoid(jnp.dot(hb, wg, precision=hp) + p['b_g'])
        return jnp.sum((v * g).reshape(-1, idx, gdim), axis=1)

    def ref_mean(h, p, idx):
        hb = _bf(h)
        hm = jnp.mean(hb.reshape(-1, idx, ndim), axis=1)
        return jnp.dot(hm, p['w_f'], precision=hp) + p['b_f']

    # 1) gsum path, tiny batch (single full-array block, grid=(1,))
    h = jax.random.normal(kh, (B * idx, ndim), dtype=jnp.float32)
    out = jax.block_until_ready(graph_aggr(h, idx, params, aggr='gsum'))
    assert out.shape == (B, gdim)
    assert jnp.allclose(out, ref_gsum(h, params, idx), rtol=5e-3, atol=5e-3)

    # 2) mean path (reduce-then-matmul kernel)
    out_mean = jax.block_until_ready(graph_aggr(h, idx, params, aggr='mean'))
    assert jnp.allclose(out_mean, ref_mean(h, params, idx), rtol=5e-3, atol=5e-3)

    # 3) tiled "parallel" grid path picked automatically (bg=8 -> grid=(2,))
    B2, idx2 = 16, 8
    h2 = jax.random.normal(kh2, (B2 * idx2, ndim), dtype=jnp.float32)
    out2 = jax.block_until_ready(graph_aggr(h2, idx2, params, aggr='gsum'))
    assert out2.shape == (B2, gdim)
    assert jnp.allclose(out2, ref_gsum(h2, params, idx2), rtol=5e-3, atol=5e-3)

    # 4) ragged batch: B=10 with 8-graph blocks -> zero-padded last block
    B3, idx3 = 10, 8
    h3 = jax.random.normal(kh3, (B3 * idx3, ndim), dtype=jnp.float32)
    out3 = jax.block_until_ready(
        graph_aggr(h3, idx3, params, aggr='gsum', graphs_per_block=8))
    assert out3.shape == (B3, gdim)
    assert jnp.allclose(out3, ref_gsum(h3, params, idx3), rtol=5e-3, atol=5e-3)

    print("KERNEL_OK")
</pallas_src>

<mosaic_0001>
module attributes {stable_mosaic.version = 11 : i64} {
  func.func @_graph_aggr_gsum_kernel(%arg0: i32, %arg1: memref<16x32xbf16, #tpu.memory_space<vmem>>, %arg2: memref<32x128xbf16, #tpu.memory_space<vmem>>, %arg3: memref<1x128xf32, #tpu.memory_space<vmem>>, %arg4: memref<2x16xf32, #tpu.memory_space<vmem>>) attributes {dimension_semantics = [#tpu.dimension_semantics<parallel>], iteration_bounds = array<i64: 1>, scalar_prefetch = 0 : i64, scratch_operands = 0 : i64, tpu.core_type = #tpu.core_type<tc>, window_params = [{transform_indices = @transform_0, window_bounds = array<i64: 16, 32>}, {pipeline_mode = #tpu.pipeline_mode<synchronous>, transform_indices = @transform_1, window_bounds = array<i64: 32, 128>}, {pipeline_mode = #tpu.pipeline_mode<synchronous>, transform_indices = @transform_2, window_bounds = array<i64: 1, 128>}, {transform_indices = @transform_3, window_bounds = array<i64: 2, 16>}]} {
    %c0 = arith.constant 0 : index
    %c0_0 = arith.constant 0 : index
    %0 = vector.load %arg1[%c0, %c0_0] : memref<16x32xbf16, #tpu.memory_space<vmem>>, vector<16x32xbf16>
    %c0_1 = arith.constant 0 : index
    %c0_2 = arith.constant 0 : index
    %1 = vector.load %arg2[%c0_1, %c0_2] : memref<32x128xbf16, #tpu.memory_space<vmem>>, vector<32x128xbf16>
    %cst = arith.constant dense<0.000000e+00> : vector<16x128xf32>
    %2 = tpu.matmul %0, %1, %cst {dimension_numbers = #tpu.dot_dimension_numbers<[1], [0], [0], [1], [0, 0, 1, 1], [], []>} : vector<16x32xbf16>, vector<32x128xbf16>, vector<16x128xf32> -> vector<16x128xf32>
    %c0_3 = arith.constant 0 : index
    %c0_4 = arith.constant 0 : index
    %3 = vector.load %arg3[%c0_3, %c0_4] : memref<1x128xf32, #tpu.memory_space<vmem>>, vector<1x128xf32>
    %4 = vector.broadcast %3 : vector<1x128xf32> to vector<16x128xf32>
    %5 = arith.addf %2, %4 : vector<16x128xf32>
    %6 = vector.extract_strided_slice %5 {offsets = [0, 0], sizes = [16, 16], strides = [1, 1]} : vector<16x128xf32> to vector<16x16xf32>
    %7 = vector.extract_strided_slice %5 {offsets = [0, 16], sizes = [16, 16], strides = [1, 1]} : vector<16x128xf32> to vector<16x16xf32>
    %8 = arith.negf %7 : vector<16x16xf32>
    %9 = math.exp %8 : vector<16x16xf32>
    %cst_5 = arith.constant 1.000000e+00 : f32
    %10 = vector.broadcast %cst_5 : f32 to vector<16x16xf32>
    %11 = arith.addf %10, %9 : vector<16x16xf32>
    %12 = arith.divf %10, %11 : vector<16x16xf32>
    %13 = arith.mulf %6, %12 : vector<16x16xf32>
    %14 = vector.shape_cast %13 : vector<16x16xf32> to vector<2x8x16xf32>
    %cst_6 = arith.constant dense<0.000000e+00> : vector<2x16xf32>
    %15 = vector.multi_reduction <add>, %14, %cst_6 [1] : vector<2x8x16xf32> to vector<2x16xf32>
    %c0_7 = arith.constant 0 : index
    %c0_8 = arith.constant 0 : index
    %16 = vector.load %arg4[%c0_7, %c0_8] : memref<2x16xf32, #tpu.memory_space<vmem>>, vector<2x16xf32>
    tpu.vector_store %arg4[%c0_7, %c0_8], %15 {strides = array<i32>} : memref<2x16xf32, #tpu.memory_space<vmem>>, vector<2x16xf32>,
    return
  }
  func.func @transform_0(%arg0: i32) -> (i32, i32) {
    %c0_i32 = arith.constant 0 : i32
    %c0_i32_0 = arith.constant 0 : i32
    return %arg0, %c0_i32 : i32, i32
  }
  func.func @transform_1(%arg0: i32) -> (i32, i32) {
    %c0_i32 = arith.constant 0 : i32
    %c0_i32_0 = arith.constant 0 : i32
    %c0_i32_1 = arith.constant 0 : i32
    return %c0_i32, %c0_i32_0 : i32, i32
  }
  func.func @transform_2(%arg0: i32) -> (i32, i32) {
    %c0_i32 = arith.constant 0 : i32
    %c0_i32_0 = arith.constant 0 : i32
    %c0_i32_1 = arith.constant 0 : i32
    return %c0_i32, %c0_i32_0 : i32, i32
  }
  func.func @transform_3(%arg0: i32) -> (i32, i32) {
    %c0_i32 = arith.constant 0 : i32
    %c0_i32_0 = arith.constant 0 : i32
    return %arg0, %c0_i32 : i32, i32
  }
}

</mosaic_0001>

<bundles_post_ra>
// kernel: tpu_custom_call.1
= control target key start
LH: loop header
LB: loop body
LE: loop exit
PB: predicated region body
PF: predicated region fallthrough
CT: control target
= control target key end

     0   :  { %8 = vsyncpa [#allocation3], 0  ;;  %s322_s0 = inlined_call_operand.hbm [shape: bf16[16,32], index: 0, kind: input, shape index: {}]   ;;  %s323_s1 = inlined_call_operand.hbm [shape: bf16[32,128], index: 1, kind: input, shape index: {}]   ;;  %s324_s2 = inlined_call_operand.vmem [shape: f32[1,128], index: 2, kind: input, shape index: {}]   ;;  %s325_s3 = inlined_call_operand.hbm [shape: f32[2,16], index: 3, kind: output, shape index: {}]  }
   0x1   :  { %9 = vsyncpa [#allocation6], 0 }
   0x2   :  { %10 = vsyncpa [#allocation4], 0  ;;  %s282_s12 = smov [#allocation2]  }
   0x3   :  { %s16_s13 = sshll.u32 %s282_s12, 4  ;;  %s17_s13 = int_to_ptr.vmem [resolvable:$true] %s16_s13 }
   0x4   :  { %s224_s14 = scalar_lea.vmem %s17_s13, 128  ;;  %p229_p1 = scmp.lt.s32.totalorder %s17_s13, %s17_s13 }
   0x5   :  { %p225_p0 = scmp.ne.s32.totalorder %s17_s13, %s224_s14  ;;  %p230_p2 = scmp.lt.s32.totalorder %s224_s14, %s224_s14 }
   0x7   :  { %p231_p3 = por %p230_p2, %p229_p1 }
   0x9   :  { %p232_p4 = pnand %p231_p3, %p225_p0 }
   0xb   :  { %235 = shalt.err (!%p232_p4)
}
   0xc   :  { %s283_s15 = smov 64   ;;  %s284_s16 = smov 4  }
   0xd   :  { %22 = dma.hbm_to_vmem [thread:$0]  %s322_s0, 128, %s17_s13, [#allocation3], %s283_s15, %s283_s15, %s284_s16  }
   0xe   :  { %s285_s19 = smov [#allocation5]  }
   0xf   :  { %s28_s20 = sshll.u32 %s285_s19, 4  ;;  %s29_s20 = int_to_ptr.vmem [resolvable:$true] %s28_s20 }
  0x10   :  { %s244_s21 = scalar_lea.vmem %s29_s20, 256  ;;  %p249_p6 = scmp.lt.s32.totalorder %s29_s20, %s29_s20 }
  0x11   :  { %p245_p5 = scmp.ne.s32.totalorder %s29_s20, %s244_s21  ;;  %p250_p7 = scmp.lt.s32.totalorder %s244_s21, %s244_s21 }
  0x13   :  { %p251_p8 = por %p250_p7, %p249_p6 }
  0x15   :  { %p252_p9 = pnand %p251_p8, %p245_p5 }
  0x17   :  { %255 = shalt.err (!%p252_p9)
}
  0x18   :  { %34 = dma.hbm_to_vmem [thread:$0]  %s323_s1, 256, %s29_s20, [#allocation6], %s283_s15, %s283_s15, %s284_s16  }
  0x19   :  { %276 = dma.done.wait [#allocation3], 128  }
  0x1a   :  { %277 = vsyncadd [#allocation3], 4294967168 }
  0x1b   :  { %278 = dma.done.wait [#allocation6], 256  }
  0x1c   :  { %279 = vsyncadd [#allocation6], 4294967040  ;;  %v286_v0 = vmov 0.0   ;;  %vm287_vm0 = vmmov 0   ;;  %v205_v1 = vld [vmem:[#allocation5 + $0x8] sm:$0xff]   ;;  %v206_v2 = vld [vmem:[#allocation5] sm:$0xff]  }
  0x1d   :  { %189 = vmatprep.subr.bf16.mxu0 %v286_v0  ;;  %193 = vmatprep.mubr.msk.bf16.mxu0 %vm287_vm0, %v286_v0  ;;  %v207_v3 = vld [vmem:[#allocation2] sm:$0xff]   ;;  %vm74_vm1 = vcmask 261120   ;;  %s288_s1 = smov 112   ;;  %vm141_vm2 = vcmask 130048   ;;  %vm158_vm3 = vcmask 1041409   ;;  %vm161_vm4 = vcmask 123904  }
  0x1e   :  { %190 = vmatpush3.bf16.msra.mxu0 %v205_v1  ;;  %v179_v4 = vld [vmem:[%s324_s2] ss:$0 sm:$0xff]  ;;  %s289_s2 = smov [#allocation7]  }
  0x1f   :  { %191 = vmatprep.subr.bf16.mxu0 %v286_v0  ;;  %s169_s25 = sshll.u32 %s289_s2, 4  ;;  %s170_s25 = int_to_ptr.vmem [resolvable:$true] %s169_s25 }
  0x20   :  { %s256_s26 = scalar_lea.vmem %s170_s25, 32  ;;  %p261_p11 = scmp.lt.s32.totalorder %s170_s25, %s170_s25 }
  0x21   :  { %p257_p10 = scmp.ne.s32.totalorder %s170_s25, %s256_s26  ;;  %p262_p12 = scmp.lt.s32.totalorder %s256_s26, %s256_s26 }
  0x22   :  { %192 = vmatpush3.bf16.msra.mxu0 %v206_v2 }
  0x23   :  { %p263_p13 = por %p262_p12, %p261_p11 }
  0x25   :  { %194 = vmatmul.mubr.msk.bf16.vlgmr.msra.gmra.mxu0 %vm74_vm1, %v207_v3  ;;  %p264_p0 = pnand %p263_p13, %p257_p10 }
  0xe5   :  { %v112_v5 = vpop.f32.mrf.mxu0 }
  0xe6   :  { %v113_v6 = vadd.f32 %v179_v4, %v112_v5 }
  0xe7   :  { %v195_v7 = vpop.f32.mrf.mxu0 }
  0xe8   :  { %v184_v8 = vmul.f32 -1.442695, %v113_v6 }
  0xe9   :  { %v115_v9 = vpop.f32.mrf.mxu0 }
  0xea   :  { %208 = vpow2.f32 %v184_v8  ;;  %v116_v10 = vadd.f32 %v179_v4, %v115_v9 }
  0xeb   :  { %v196_v11 = vpop.f32.mrf.mxu0 }
  0xec   :  { %v185_v12 = vmul.f32 -1.442695, %v116_v10 }
  0xee   :  { %210 = vpow2.f32 %v185_v12 }
  0xf7   :  { %v209_v13 = vpop.eup %208 }
  0xf8   :  { %v125_v14 = vadd.f32 1.0, %v209_v13 }
  0xfa   :  { %212 = vrcp.f32 %v125_v14 }
  0xfb   :  { %v211_v15 = vpop.eup %210 }
  0xfc   :  { %v126_v16 = vadd.f32 1.0, %v211_v15 }
  0xfe   :  { %214 = vrcp.f32 %v126_v16 }
 0x107   :  { %v213_v17 = vpop.eup %212 }
 0x108   :  { %133 = vrot.lane.b32.xlu0 %v213_v17, %s288_s1 }
 0x10b   :  { %v215_v18 = vpop.eup %214 }
 0x10c   :  { %135 = vrot.lane.b32.xlu0 %v215_v18, %s288_s1 }
 0x17a   :  { %v134_v19 = vpop.permute.xlu0 %133 }
 0x17b   :  { %v139_v20 = vmul.f32 %v134_v19, %v113_v6 }
 0x17d   :  { %v142_v21 = vsel %vm141_vm2, %v139_v20, 0.0 }
 0x17e   :  { %v143_v22 = vrot.slane %v142_v21, 4  ;;  %v136_v23 = vpop.permute.xlu0 %135 }
 0x17f   :  { %v140_v24 = vmul.f32 %v136_v23, %v116_v10 }
 0x180   :  { %v144_v25 = vadd.f32 %v143_v22, %v142_v21 }
 0x181   :  { %v149_v26 = vsel %vm141_vm2, %v140_v24, 0.0 }
 0x182   :  { %v145_v27 = vrot.slane %v144_v25, 2  ;;  %v150_v28 = vrot.slane %v149_v26, 4 }
 0x184   :  { %v146_v29 = vadd.f32 %v145_v27, %v144_v25  ;;  %v151_v30 = vadd.f32 %v150_v28, %v149_v26 }
 0x186   :  { %v152_v31 = vrot.slane %v151_v30, 2  ;;  %v147_v32 = vrot.slane %v146_v29, 1 }
 0x188   :  { %v153_v33 = vadd.f32 %v152_v31, %v151_v30  ;;  %v148_v35 = vadd.f32 %v147_v32, %v146_v29 }
 0x18a   :  { %v154_v34 = vrot.slane %v153_v33, 1 }
 0x18c   :  { %v155_v36 = vadd.f32 %v154_v34, %v153_v33 }
 0x18e   :  { %v159_v37 = vsel %vm158_vm3, %v155_v36, %v148_v35 }
 0x18f   :  { %162 = vst.msk [vmem:[#allocation7] sm:$0x3] %vm161_vm4, %v159_v37 }
 0x190   :  { %267 = shalt.err (!%p264_p0)
}
 0x191   :  { %172 = dma.vmem_to_hbm [thread:$0]  %s170_s25, 32, %s325_s3, [#allocation4]  }
 0x192   :  { %280 = dma.done.wait [#allocation4], 32  }
 0x193   :  { %281 = vsyncadd [#allocation4], 4294967264 }
 0x194   :  { %176 = vsyncpa [#allocation3], 1 }
 0x195   :  { %177 = vsyncpa [#allocation6], 1 }
 0x196   :  { %178 = vsyncpa [#allocation4], 1 }

</bundles_post_ra>
